<compile_context>
chip_gen: v7x
topology: tpu7x:2x2x1
jax: 0.10.0
libtpu: 0.0.40
codegen_flags: <defaults>
</compile_context>

<pallas_src>
import functools
import math

import jax
import jax.numpy as jnp
from jax.experimental import pallas as pl
from jax.experimental.pallas import tpu as pltpu

LN_EPS = 1e-12                      # BertLayerNorm variance_epsilon


# --------------------------------------------------------------------------- hw-aware knobs
@functools.lru_cache(maxsize=None)
def _vmem_budget():
    """Scoped-VMEM budget with headroom: ~3/4 of physical, capped at 100 MiB."""
    cap = 128 * 1024 * 1024
    try:
        info = pltpu.get_tpu_info()
        cap = int(getattr(info, "vmem_capacity_bytes", cap))
    except Exception:
        pass
    return min(100 * 1024 * 1024, (cap * 3) // 4)


@functools.lru_cache(maxsize=None)
def _mxu_lane_target():
    """Output-lane target for MXU-shaped matmuls (128 on v5e, 256 otherwise)."""
    try:
        kind = jax.devices()[0].device_kind.lower()
    except Exception:
        return 256
    if "v5 lite" in kind or "v5e" in kind or "v5lite" in kind:
        return 128
    return 256


@functools.lru_cache(maxsize=None)
def _row_cap():
    """Row-tile cap for LN/FFN: smaller on 64-MiB-VMEM parts (v7x)."""
    return 256 if _vmem_budget() <= 48 * 1024 * 1024 else 1024


def _round_up(x, m):
    return ((x + m - 1) // m) * m


def _row_tiling(n_rows, cap):
    """Row tile (multiple of 8, <= cap) and the padded row count it divides."""
    tr = min(cap, _round_up(n_rows, 8))
    return tr, _round_up(n_rows, tr)


def _head_group(num_heads, head_dim, lane_target):
    """Heads per grid step so g*head_dim ~ MXU width and g divides num_heads."""
    g = max(1, min(num_heads, lane_target // max(head_dim, 1)))
    while num_heads % g:
        g -= 1
    return g


# --------------------------------------------------------------------------- shared math
def _layernorm(x, gamma, beta):
    mu = jnp.mean(x, axis=-1, keepdims=True)
    xc = x - mu
    var = jnp.mean(xc * xc, axis=-1, keepdims=True)
    return xc * jax.lax.rsqrt(var + LN_EPS) * gamma + beta


# --------------------------------------------------------------------------- kernels
def layernorm_kernel(x_ref, g_ref, b_ref, o_ref):
    o_ref[...] = _layernorm(x_ref[...], g_ref[...], b_ref[...])


def attention_kernel(g_heads, head_dim,
                     h_ref, mask_ref, wqkv_ref, bqkv_ref, wo_ref,
                     bo_ref, g1_ref, b1_ref,
                     out_ref, acc_ref, hbf_ref, ctx_ref):
    """Self-attention + output dense + residual + LayerNorm.

    Grid = (batch, head_group).  The group axis is a reduction: each step
    projects g heads with one fused QKV matmul, runs per-head softmax/context,
    packs the group's context into a bf16 scratch and accumulates its slab of
    the output dense (K = g*head_dim).  Residual + LayerNorm run once on the
    last group.
    """
    gi = pl.program_id(1)
    gd = g_heads * head_dim

    @pl.when(gi == 0)
    def _():
        acc_ref[...] = jnp.zeros_like(acc_ref)
        # Hoisted bf16 cast of the hidden states, reused by every group.
        hbf_ref[...] = h_ref[0].astype(jnp.bfloat16)

    h_bf = hbf_ref[...]                                            # [S, H] bf16

    # Fused Q|K|V projection for the whole head group: [S,H] @ [H,3*gd].
    # The 1/sqrt(head_dim) scale is folded into the Q weights/bias.
    proj = jnp.dot(h_bf, wqkv_ref[0],
                   preferred_element_type=jnp.float32) + bqkv_ref[0]

    mask = mask_ref[0]                                             # [1, S] additive

    for hh in range(g_heads):                                      # static loop
        lo = hh * head_dim
        q = proj[:, lo:lo + head_dim]
        k = proj[:, gd + lo:gd + lo + head_dim]
        v = proj[:, 2 * gd + lo:2 * gd + lo + head_dim]

        s = jax.lax.dot_general(
            q.astype(jnp.bfloat16), k.astype(jnp.bfloat16),
            (((1,), (1,)), ((), ())),
            preferred_element_type=jnp.float32) + mask             # [S, S]

        m = jnp.max(s, axis=-1, keepdims=True)
        p = jnp.exp(s - m)
        p = p * pl.reciprocal(jnp.sum(p, axis=-1, keepdims=True), approx=True)
        # TODO(synk): attention-probability dropout omitted (eval-mode no-op).

        ctx_ref[:, lo:lo + head_dim] = jnp.dot(
            p.astype(jnp.bfloat16), v.astype(jnp.bfloat16),
            preferred_element_type=jnp.float32).astype(jnp.bfloat16)

    # One output-dense slab per group (K = gd), accumulated across groups.
    acc_ref[...] += jnp.dot(ctx_ref[...], wo_ref[0],
                            preferred_element_type=jnp.float32)    # [S, H]

    @pl.when(gi == pl.num_programs(1) - 1)
    def _():
        attn_out = acc_ref[...] + bo_ref[...]
        out_ref[0] = _layernorm(attn_out + h_ref[0],
                                g1_ref[...], b1_ref[...]).astype(out_ref.dtype)


def ffn_kernel(x_ref, wi_ref, bi_ref, wd_ref, bd_ref, g2_ref, b2_ref, out_ref):
    """GELU FFN + residual + LayerNorm on a row tile of the flattened tokens."""
    x_bf = x_ref[...]                                              # [R, H] bf16
    x = x_bf.astype(jnp.float32)
    inter = jnp.dot(x_bf, wi_ref[...],
                    preferred_element_type=jnp.float32) + bi_ref[...]
    # TODO(synk): reference gelu uses exact erf; tanh approximation used here.
    c = math.sqrt(2.0 / math.pi)
    inter = 0.5 * inter * (1.0 + jnp.tanh(c * (inter + 0.044715 * inter * inter * inter)))
    ffn = jnp.dot(inter.astype(jnp.bfloat16), wd_ref[...],
                  preferred_element_type=jnp.float32) + bd_ref[...]
    out_ref[...] = _layernorm(ffn + x, g2_ref[...], b2_ref[...])


def pooler_kernel(x_ref, w_ref, b_ref, o_ref):
    o_ref[...] = jnp.tanh(
        jnp.dot(x_ref[...].astype(jnp.bfloat16), w_ref[...],
                preferred_element_type=jnp.float32) + b_ref[...])


# --------------------------------------------------------------------------- wrappers
def pallas_layernorm(x2d, gamma, beta):
    R, H = x2d.shape
    tr, Rp = _row_tiling(R, _row_cap())
    if Rp != R:                                   # rows are independent: pad, then slice
        x2d = jnp.pad(x2d, ((0, Rp - R), (0, 0)))
    const = lambda i: (0, 0)
    out = pl.pallas_call(
        layernorm_kernel,
        out_shape=jax.ShapeDtypeStruct((Rp, H), jnp.float32),
        grid_spec=pltpu.PrefetchScalarGridSpec(
            num_scalar_prefetch=0,
            grid=(Rp // tr,),
            in_specs=[pl.BlockSpec((tr, H), lambda i: (i, 0)),
                      pl.BlockSpec((1, H), const),
                      pl.BlockSpec((1, H), const)],
            out_specs=pl.BlockSpec((tr, H), lambda i: (i, 0)),
        ),
        compiler_params=pltpu.CompilerParams(
            dimension_semantics=("parallel",),
            vmem_limit_bytes=_vmem_budget(),
        ),
    )(x2d, gamma, beta)
    return out[:R] if Rp != R else out


def pallas_attention(x, add_mask, lp, num_heads, g_heads):
    B, S, H = x.shape
    hd = H // num_heads
    gd = g_heads * hd
    n_groups = num_heads // g_heads
    const2 = lambda b, gi: (0, 0)

    in_specs = [
        pl.BlockSpec((1, S, H), lambda b, gi: (b, 0, 0)),       # hidden states
        pl.BlockSpec((1, 1, S), lambda b, gi: (b, 0, 0)),       # additive mask
        pl.BlockSpec((1, H, 3 * gd), lambda b, gi: (gi, 0, 0)), # fused QKV slab
        pl.BlockSpec((1, 1, 3 * gd), lambda b, gi: (gi, 0, 0)), # fused QKV bias
        pl.BlockSpec((1, gd, H), lambda b, gi: (gi, 0, 0)),     # output-dense slab
        pl.BlockSpec((1, H), const2),                           # bo
        pl.BlockSpec((1, H), const2),                           # ln1 gamma
        pl.BlockSpec((1, H), const2),                           # ln1 beta
    ]
    return pl.pallas_call(
        functools.partial(attention_kernel, g_heads, hd),
        out_shape=jax.ShapeDtypeStruct((B, S, H), jnp.bfloat16),
        grid_spec=pltpu.PrefetchScalarGridSpec(
            num_scalar_prefetch=0,
            grid=(B, n_groups),
            in_specs=in_specs,
            out_specs=pl.BlockSpec((1, S, H), lambda b, gi: (b, 0, 0)),
            scratch_shapes=[pltpu.VMEM((S, H), jnp.float32),    # output-dense acc
                            pltpu.VMEM((S, H), jnp.bfloat16),   # hoisted bf16 hidden
                            pltpu.VMEM((S, gd), jnp.bfloat16)], # per-group context
        ),
        compiler_params=pltpu.CompilerParams(
            dimension_semantics=("parallel", "arbitrary"),
            vmem_limit_bytes=_vmem_budget(),
        ),
    )(x, add_mask, lp['wqkv'], lp['bqkv'], lp['wo'],
      lp['bo'], lp['ln1_g'], lp['ln1_b'])


def pallas_ffn(x2d, lp):
    R, H = x2d.shape
    I = lp['wi'].shape[1]
    tr, Rp = _row_tiling(R, _row_cap())
    if Rp != R:
        x2d = jnp.pad(x2d, ((0, Rp - R), (0, 0)))
    const = lambda i: (0, 0)
    out = pl.pallas_call(
        ffn_kernel,
        out_shape=jax.ShapeDtypeStruct((Rp, H), jnp.float32),
        grid_spec=pltpu.PrefetchScalarGridSpec(
            num_scalar_prefetch=0,
            grid=(Rp // tr,),
            in_specs=[
                pl.BlockSpec((tr, H), lambda i: (i, 0)),
                pl.BlockSpec((H, I), const),
                pl.BlockSpec((1, I), const),
                pl.BlockSpec((I, H), const),
                pl.BlockSpec((1, H), const),
                pl.BlockSpec((1, H), const),
                pl.BlockSpec((1, H), const),
            ],
            out_specs=pl.BlockSpec((tr, H), lambda i: (i, 0)),
        ),
        compiler_params=pltpu.CompilerParams(
            dimension_semantics=("parallel",),
            vmem_limit_bytes=_vmem_budget(),
        ),
    )(x2d, lp['wi'], lp['bi'], lp['wd'], lp['bd'], lp['ln2_g'], lp['ln2_b'])
    return out[:R] if Rp != R else out


def pallas_pooler(first_tok, w, b):
    vs = pl.BlockSpec(memory_space=pltpu.MemorySpace.VMEM)
    return pl.pallas_call(
        pooler_kernel,
        out_shape=jax.ShapeDtypeStruct((first_tok.shape[0], w.shape[1]), jnp.float32),
        in_specs=[vs, vs, vs],
        out_specs=vs,
        compiler_params=pltpu.CompilerParams(vmem_limit_bytes=_vmem_budget()),
    )(first_tok, w, b)


# --------------------------------------------------------------------------- params
def _fuse_qkv(wq, wk, wv, bq, bk, bv, n_groups, gd, scale):
    """Pack per-group [H, 3*gd] Q|K|V slabs; 1/sqrt(hd) folded into Q."""
    H = wq.shape[0]

    def grp_w(w):                                      # [H, H] -> [ng, H, gd]
        return w.reshape(H, n_groups, gd).transpose(1, 0, 2)

    def grp_b(b):                                      # [H]    -> [ng, 1, gd]
        return b.reshape(n_groups, 1, gd)

    wqkv = jnp.concatenate([grp_w(wq) * scale, grp_w(wk), grp_w(wv)],
                           axis=-1).astype(jnp.bfloat16)
    bqkv = jnp.concatenate([grp_b(bq) * scale, grp_b(bk), grp_b(bv)],
                           axis=-1).astype(jnp.float32)
    return wqkv, bqkv


def init_params(config, key):
    H = config['hidden_size']
    I = config['intermediate_size']
    V = config['vocab_size']
    P = config['max_position_embeddings']
    T = config['type_vocab_size']
    L = config['num_hidden_layers']
    nh = config['num_attention_heads']
    hd = H // nh

    g = _head_group(nh, hd, _mxu_lane_target())
    n_groups = nh // g
    gd = g * hd
    scale = 1.0 / math.sqrt(hd)

    def normal(k, shape):
        return (0.02 * jax.random.normal(k, shape)).astype(jnp.float32)

    keys = iter(jax.random.split(key, 4 + 6 * L))

    params = {
        'word_emb': normal(next(keys), (V, H)),
        'pos_emb': normal(next(keys), (P, H)),
        'tok_emb': normal(next(keys), (T, H)),
        'emb_ln_g': jnp.ones((1, H), jnp.float32),
        'emb_ln_b': jnp.zeros((1, H), jnp.float32),
        'pool_w': normal(next(keys), (H, H)).astype(jnp.bfloat16),
        'pool_b': jnp.zeros((1, H), jnp.float32),
        'qkv_group': g,
        'layers': [],
    }
    zero_b = jnp.zeros((H,), jnp.float32)
    for _ in range(L):
        wq = normal(next(keys), (H, H))
        wk = normal(next(keys), (H, H))
        wv = normal(next(keys), (H, H))
        wqkv, bqkv = _fuse_qkv(wq, wk, wv, zero_b, zero_b, zero_b,
                               n_groups, gd, scale)
        wo_full = normal(next(keys), (H, H))            # [in = concat(heads), out = H]
        lp = {
            'wqkv': wqkv, 'bqkv': bqkv,
            'wo': wo_full.reshape(n_groups, gd, H).astype(jnp.bfloat16),
            'bo': jnp.zeros((1, H), jnp.float32),
            'ln1_g': jnp.ones((1, H), jnp.float32), 'ln1_b': jnp.zeros((1, H), jnp.float32),
            'wi': normal(next(keys), (H, I)).astype(jnp.bfloat16),
            'bi': jnp.zeros((1, I), jnp.float32),
            'wd': normal(next(keys), (I, H)).astype(jnp.bfloat16),
            'bd': jnp.zeros((1, H), jnp.float32),
            'ln2_g': jnp.ones((1, H), jnp.float32), 'ln2_b': jnp.zeros((1, H), jnp.float32),
        }
        params['layers'].append(lp)
    return params


# --------------------------------------------------------------------------- model
def bert_embeddings(params, input_ids, token_type_ids):
    B, S = input_ids.shape
    H = params['word_emb'].shape[1]
    we = params['word_emb'][input_ids]                 # gathers: plain-JAX glue
    pe = params['pos_emb'][:S][None, :, :]
    te = params['tok_emb'][token_type_ids]
    x = (we + pe + te).astype(jnp.float32)
    # TODO(synk): embedding dropout omitted (eval-mode no-op).
    x2 = pallas_layernorm(x.reshape(B * S, H), params['emb_ln_g'], params['emb_ln_b'])
    return x2.reshape(B, S, H)


def bert_forward(params, config, input_ids, token_type_ids=None,
                 attention_mask=None, output_all_encoded_layers=True):
    if token_type_ids is None:
        token_type_ids = jnp.zeros_like(input_ids)
    if attention_mask is None:
        attention_mask = jnp.ones_like(input_ids)
    # extended mask [B,1,1,S] of the reference, stored as [B,1,S] additive mask
    add_mask = ((1.0 - attention_mask.astype(jnp.float32)) * -10000.0)[:, None, :]

    x = bert_embeddings(params, input_ids, token_type_ids)
    B, S, H = x.shape
    nh = config['num_attention_heads']
    g = params['qkv_group']

    encoded_layers = []
    for lp in params['layers']:
        h1 = pallas_attention(x, add_mask, lp, nh, g)              # attn + LN1 (bf16 out)
        x = pallas_ffn(h1.reshape(B * S, H), lp).reshape(B, S, H)  # FFN  + LN2 (f32 out)
        encoded_layers.append(x)

    pooled = pallas_pooler(encoded_layers[-1][:, 0, :],
                           params['pool_w'], params['pool_b'])

    if not output_all_encoded_layers:
        return encoded_layers[-1], pooled
    return encoded_layers, pooled


# --------------------------------------------------------------------------- main
if __name__ == "__main__":
    config = {
        'vocab_size': 100,
        'hidden_size': 32,
        'num_hidden_layers': 2,
        'num_attention_heads': 4,
        'intermediate_size': 64,
        'max_position_embeddings': 32,
        'type_vocab_size': 2,
    }
    B, S = 2, 8

    root = jax.random.PRNGKey(0)
    k_param, k_ids, k_tt = jax.random.split(root, 3)

    params = init_params(config, k_param)
    input_ids = jax.random.randint(k_ids, (B, S), 0, config['vocab_size'], dtype=jnp.int32)
    token_type_ids = (jnp.arange(S)[None, :] >= S // 2).astype(jnp.int32) * jnp.ones((B, 1), jnp.int32)
    attention_mask = jnp.ones((B, S), jnp.int32).at[1, S - 2:].set(0)  # mask tail of example 1

    encoded_layers, pooled = bert_forward(
        params, config, input_ids,
        token_type_ids=token_type_ids,
        attention_mask=attention_mask,
        output_all_encoded_layers=True,
    )

    for layer_out in encoded_layers:
        jax.block_until_ready(layer_out)
    jax.block_until_ready(pooled)

    assert encoded_layers[-1].shape == (B, S, config['hidden_size'])
    assert pooled.shape == (B, config['hidden_size'])
    print("KERNEL_OK")
</pallas_src>

<mosaic_0001>
module attributes {stable_mosaic.version = 11 : i64} {
  func.func @layernorm_kernel(%arg0: i32, %arg1: memref<16x32xf32, #tpu.memory_space<vmem>>, %arg2: memref<1x32xf32, #tpu.memory_space<vmem>>, %arg3: memref<1x32xf32, #tpu.memory_space<vmem>>, %arg4: memref<16x32xf32, #tpu.memory_space<vmem>>) attributes {dimension_semantics = [#tpu.dimension_semantics<parallel>], iteration_bounds = array<i64: 1>, scalar_prefetch = 0 : i64, scratch_operands = 0 : i64, tpu.core_type = #tpu.core_type<tc>, window_params = [{transform_indices = @transform_0, window_bounds = array<i64: 16, 32>}, {pipeline_mode = #tpu.pipeline_mode<synchronous>, transform_indices = @transform_1, window_bounds = array<i64: 1, 32>}, {pipeline_mode = #tpu.pipeline_mode<synchronous>, transform_indices = @transform_2, window_bounds = array<i64: 1, 32>}, {transform_indices = @transform_3, window_bounds = array<i64: 16, 32>}]} {
    %c0 = arith.constant 0 : index
    %c0_0 = arith.constant 0 : index
    %0 = vector.load %arg1[%c0, %c0_0] : memref<16x32xf32, #tpu.memory_space<vmem>>, vector<16x32xf32>
    %c0_1 = arith.constant 0 : index
    %c0_2 = arith.constant 0 : index
    %1 = vector.load %arg2[%c0_1, %c0_2] : memref<1x32xf32, #tpu.memory_space<vmem>>, vector<1x32xf32>
    %c0_3 = arith.constant 0 : index
    %c0_4 = arith.constant 0 : index
    %2 = vector.load %arg3[%c0_3, %c0_4] : memref<1x32xf32, #tpu.memory_space<vmem>>, vector<1x32xf32>
    %cst = arith.constant dense<0.000000e+00> : vector<16xf32>
    %3 = vector.multi_reduction <add>, %0, %cst [1] : vector<16x32xf32> to vector<16xf32>
    %4 = vector.shape_cast %3 : vector<16xf32> to vector<16x1xf32>
    %cst_5 = arith.constant 3.200000e+01 : f32
    %5 = vector.broadcast %cst_5 : f32 to vector<16x1xf32>
    %6 = arith.divf %4, %5 : vector<16x1xf32>
    %7 = vector.broadcast %6 : vector<16x1xf32> to vector<16x32xf32>
    %8 = arith.subf %0, %7 : vector<16x32xf32>
    %9 = arith.mulf %8, %8 : vector<16x32xf32>
    %cst_6 = arith.constant dense<0.000000e+00> : vector<16xf32>
    %10 = vector.multi_reduction <add>, %9, %cst_6 [1] : vector<16x32xf32> to vector<16xf32>
    %11 = vector.shape_cast %10 : vector<16xf32> to vector<16x1xf32>
    %cst_7 = arith.constant 3.200000e+01 : f32
    %12 = vector.broadcast %cst_7 : f32 to vector<16x1xf32>
    %13 = arith.divf %11, %12 : vector<16x1xf32>
    %cst_8 = arith.constant 9.99999996E-13 : f32
    %14 = vector.broadcast %cst_8 : f32 to vector<16x1xf32>
    %15 = arith.addf %13, %14 : vector<16x1xf32>
    %16 = math.rsqrt %15 : vector<16x1xf32>
    %17 = vector.broadcast %16 : vector<16x1xf32> to vector<16x32xf32>
    %18 = arith.mulf %8, %17 : vector<16x32xf32>
    %19 = vector.broadcast %1 : vector<1x32xf32> to vector<16x32xf32>
    %20 = arith.mulf %18, %19 : vector<16x32xf32>
    %21 = vector.broadcast %2 : vector<1x32xf32> to vector<16x32xf32>
    %22 = arith.addf %20, %21 : vector<16x32xf32>
    %c0_9 = arith.constant 0 : index
    %c0_10 = arith.constant 0 : index
    %23 = vector.load %arg4[%c0_9, %c0_10] : memref<16x32xf32, #tpu.memory_space<vmem>>, vector<16x32xf32>
    tpu.vector_store %arg4[%c0_9, %c0_10], %22 {strides = array<i32>} : memref<16x32xf32, #tpu.memory_space<vmem>>, vector<16x32xf32>,
    return
  }
  func.func @transform_0(%arg0: i32) -> (i32, i32) {
    %c0_i32 = arith.constant 0 : i32
    %c0_i32_0 = arith.constant 0 : i32
    return %arg0, %c0_i32 : i32, i32
  }
  func.func @transform_1(%arg0: i32) -> (i32, i32) {
    %c0_i32 = arith.constant 0 : i32
    %c0_i32_0 = arith.constant 0 : i32
    %c0_i32_1 = arith.constant 0 : i32
    return %c0_i32, %c0_i32_0 : i32, i32
  }
  func.func @transform_2(%arg0: i32) -> (i32, i32) {
    %c0_i32 = arith.constant 0 : i32
    %c0_i32_0 = arith.constant 0 : i32
    %c0_i32_1 = arith.constant 0 : i32
    return %c0_i32, %c0_i32_0 : i32, i32
  }
  func.func @transform_3(%arg0: i32) -> (i32, i32) {
    %c0_i32 = arith.constant 0 : i32
    %c0_i32_0 = arith.constant 0 : i32
    return %arg0, %c0_i32 : i32, i32
  }
}

</mosaic_0001>

<bundles_post_ra>
// kernel: tpu_custom_call.1
= control target key start
LH: loop header
LB: loop body
LE: loop exit
PB: predicated region body
PF: predicated region fallthrough
CT: control target
= control target key end

     0   :  { %8 = vsyncpa [#allocation3], 0  ;;  %s319_s0 = inlined_call_operand.hbm [shape: f32[16,32], index: 0, kind: input, shape index: {}]   ;;  %s320_s1 = inlined_call_operand.hbm [shape: f32[1,32], index: 1, kind: input, shape index: {}]   ;;  %s321_s2 = inlined_call_operand.hbm [shape: f32[1,32], index: 2, kind: input, shape index: {}]   ;;  %s322_s3 = inlined_call_operand.hbm [shape: f32[16,32], index: 3, kind: output, shape index: {}]  }
   0x1   :  { %9 = vsyncpa [#allocation6], 0 }
   0x2   :  { %10 = vsyncpa [#allocation4], 0  ;;  %s226_s12 = smov [#allocation5]   ;;  %s227_s14 = smov [#allocation2]  }
   0x3   :  { %s29_s13 = sshll.u32 %s226_s12, 4  ;;  %s16_s15 = sshll.u32 %s227_s14, 4  ;;  %s30_s13 = int_to_ptr.vmem [resolvable:$true] %s29_s13  ;;  %s252_s15 = int_to_ptr.vmem [resolvable:$true] %s16_s15 }
   0x4   :  { %s132_s18 = scalar_lea.hbm %s320_s1, 16 }
   0x5   :  { %p133_p0 = scmp.ne.s32.totalorder %s320_s1, %s132_s18  ;;  %p136_p1 = scmp.lt.u32.totalorder %s132_s18, %s320_s1 }
   0x7   :  { %p138_p2 = pnand %p136_p1, %p133_p0 }
   0x9   :  { %141 = shalt.err (!%p138_p2)
}
   0xa   :  { %s142_s23 = scalar_lea.vmem %s30_s13, 16  ;;  %s146_s24 = scalar_lea.vmem %s30_s13, 32 }
   0xb   :  { %p143_p3 = scmp.ne.s32.totalorder %s30_s13, %s142_s23  ;;  %p147_p4 = scmp.lt.s32.totalorder %s30_s13, %s30_s13 }
   0xc   :  { %p148_p5 = scmp.lt.s32.totalorder %s146_s24, %s142_s23 }
   0xe   :  { %p149_p6 = por %p148_p5, %p147_p4 }
  0x10   :  { %p150_p7 = pnand %p149_p6, %p143_p3 }
  0x12   :  { %153 = shalt.err (!%p150_p7)
}
  0x13   :  { %32 = dma.hbm_to_vmem [thread:$0]  %s320_s1, 16, %s30_s13, [#allocation6]  }
  0x14   :  { %s154_s29 = scalar_lea.hbm %s319_s0, 256 }
  0x15   :  { %p155_p8 = scmp.ne.s32.totalorder %s319_s0, %s154_s29  ;;  %p158_p9 = scmp.lt.u32.totalorder %s154_s29, %s319_s0 }
  0x17   :  { %p160_p10 = pnand %p158_p9, %p155_p8 }
  0x19   :  { %163 = shalt.err (!%p160_p10)
}
  0x1a   :  { %s164_s7 = scalar_lea.vmem %s252_s15, 256  ;;  %p169_p12 = scmp.lt.s32.totalorder %s252_s15, %s252_s15 }
  0x1b   :  { %p165_p11 = scmp.ne.s32.totalorder %s252_s15, %s164_s7  ;;  %p170_p13 = scmp.lt.s32.totalorder %s164_s7, %s164_s7 }
  0x1d   :  { %p171_p0 = por %p170_p13, %p169_p12 }
  0x1f   :  { %p172_p1 = pnand %p171_p0, %p165_p11 }
  0x21   :  { %175 = shalt.err (!%p172_p1)
}
  0x22   :  { %s228_s1 = smov 128   ;;  %s229_s8 = smov 8  }
  0x23   :  { %22 = dma.hbm_to_vmem [thread:$0]  %s319_s0, 256, %s252_s15, [#allocation3], %s228_s1, %s228_s1, %s229_s8  }
  0x24   :  { %s230_s11 = smov [#allocation7]   ;;  %s176_s16 = scalar_lea.hbm %s321_s2, 16 }
  0x25   :  { %s39_s12 = sshll.u32 %s230_s11, 4  ;;  %p177_p2 = scmp.ne.s32.totalorder %s321_s2, %s176_s16  ;;  %s40_s12 = int_to_ptr.vmem [resolvable:$true] %s39_s12 }
  0x26   :  { %p180_p3 = scmp.lt.u32.totalorder %s176_s16, %s321_s2 }
  0x28   :  { %p182_p4 = pnand %p180_p3, %p177_p2 }
  0x2a   :  { %185 = shalt.err (!%p182_p4)
}
  0x2b   :  { %s186_s21 = scalar_lea.vmem %s40_s12, 16  ;;  %s190_s0 = scalar_lea.vmem %s40_s12, 32 }
  0x2c   :  { %p187_p5 = scmp.ne.s32.totalorder %s40_s12, %s186_s21  ;;  %p191_p6 = scmp.lt.s32.totalorder %s40_s12, %s40_s12 }
  0x2d   :  { %p192_p7 = scmp.lt.s32.totalorder %s190_s0, %s186_s21 }
  0x2f   :  { %p193_p8 = por %p192_p7, %p191_p6 }
  0x31   :  { %p194_p9 = pnand %p193_p8, %p187_p5 }
  0x33   :  { %197 = shalt.err (!%p194_p9)
}
  0x34   :  { %42 = dma.hbm_to_vmem [thread:$0]  %s321_s2, 16, %s40_s12, [#allocation6]  }
  0x35   :  { %220 = dma.done.wait [#allocation3], 256  }
  0x36   :  { %221 = vsyncadd [#allocation3], 4294967040 }
  0x37   :  { %222 = dma.done.wait [#allocation6], 32  }
  0x38   :  { %223 = vsyncadd [#allocation6], 4294967264  ;;  %vm56_vm0 = vcmask 261120   ;;  %v52_v0 = vld [vmem:[#allocation2] sm:$0xff]  ;;  %v53_v1 = vld [vmem:[#allocation2 + $0x8] sm:$0xff]  ;;  %s231_s2 = smov [#allocation8]  }
  0x39   :  { %v57_v2 = vsel %vm56_vm0, %v52_v0, 0.0  ;;  %v60_v3 = vsel %vm56_vm0, %v53_v1, 0.0  ;;  %v120_v21 = vld [vmem:[#allocation5] ss:$0 sm:$0xff]  ;;  %v121_v23 = vld [vmem:[#allocation7] ss:$0 sm:$0xff] }
  0x3a   :  { %58 = vadd.xlane.f32.xlu0 %v57_v2  ;;  %s107_s23 = sshll.u32 %s231_s2, 4  ;;  %s108_s23 = int_to_ptr.vmem [resolvable:$true] %s107_s23 }
  0x3b   :  { %s198_s24 = scalar_lea.vmem %s108_s23, 256  ;;  %p203_p11 = scmp.lt.s32.totalorder %s108_s23, %s108_s23 }
  0x3c   :  { %p199_p10 = scmp.ne.s32.totalorder %s108_s23, %s198_s24  ;;  %p204_p12 = scmp.lt.s32.totalorder %s198_s24, %s198_s24 }
  0x3e   :  { %61 = vadd.xlane.f32.xlu0 %v60_v3  ;;  %p205_p13 = por %p204_p12, %p203_p11 }
  0x40   :  { %p206_p0 = pnand %p205_p13, %p199_p10 }
  0xc7   :  { %v59_v4 = vpop.xlane.xlu0 %58 }
  0xc8   :  { %v64_v5 = vmul.f32 0.03125, %v59_v4 }
  0xca   :  { %v66_v6 = vsub.f32 %v52_v0, %v64_v5 }
  0xcb   :  { %v62_v7 = vpop.xlane.xlu0 %61 }
  0xcc   :  { %v65_v8 = vmul.f32 0.03125, %v62_v7  ;;  %v68_v9 = vmul.f32 %v66_v6, %v66_v6 }
  0xce   :  { %v67_v10 = vsub.f32 %v53_v1, %v65_v8  ;;  %v70_v11 = vsel %vm56_vm0, %v68_v9, 0.0 }
  0xcf   :  { %71 = vadd.xlane.f32.xlu1 %v70_v11 }
  0xd0   :  { %v69_v12 = vmul.f32 %v67_v10, %v67_v10 }
  0xd2   :  { %v73_v13 = vsel %vm56_vm0, %v69_v12, 0.0 }
  0xd3   :  { %74 = vadd.xlane.f32.xlu1 %v73_v13 }
 0x15c   :  { %v72_v14 = vpop.xlane.xlu1 %71 }
 0x15d   :  { %v76_v15 = vmul.f32 0.03125, %v72_v14 }
 0x15f   :  { %v78_v16 = vadd.f32 1e-12, %v76_v15 }
 0x160   :  { %v75_v17 = vpop.xlane.xlu1 %74 }
 0x161   :  { %128 = vrsqrt.f32 %v78_v16  ;;  %v77_v18 = vmul.f32 0.03125, %v75_v17 }
 0x163   :  { %v79_v19 = vadd.f32 1e-12, %v77_v18 }
 0x165   :  { %130 = vrsqrt.f32 %v79_v19 }
 0x16b   :  { %v129_v20 = vpop.eup %128 }
 0x16c   :  { %v82_v22 = vmul.f32 %v129_v20, %v66_v6 }
 0x16e   :  { %v90_v24 = vmul.f32 %v120_v21, %v82_v22 }
 0x16f   :  { %v131_v25 = vpop.eup %130 }
 0x170   :  { %v83_v26 = vmul.f32 %v131_v25, %v67_v10  ;;  %v98_v27 = vadd.f32 %v121_v23, %v90_v24 }
 0x172   :  { %v91_v28 = vmul.f32 %v120_v21, %v83_v26  ;;  %100 = vst.msk [vmem:[#allocation8] sm:$0xff] %vm56_vm0, %v98_v27 }
 0x174   :  { %v99_v29 = vadd.f32 %v121_v23, %v91_v28 }
 0x176   :  { %101 = vst.msk [vmem:[#allocation8 + $0x8] sm:$0xff] %vm56_vm0, %v99_v29 }
 0x177   :  { %209 = shalt.err (!%p206_p0)
}
 0x178   :  { %s210_s27 = scalar_lea.hbm %s322_s3, 256 }
 0x179   :  { %p211_p1 = scmp.ne.s32.totalorder %s322_s3, %s210_s27  ;;  %p214_p2 = scmp.lt.u32.totalorder %s210_s27, %s322_s3 }
 0x17b   :  { %p216_p3 = pnand %p214_p2, %p211_p1 }
 0x17d   :  { %219 = shalt.err (!%p216_p3)
}
 0x17e   :  { %113 = dma.vmem_to_hbm [thread:$0]  %s108_s23, 256, %s322_s3, [#allocation4], %s228_s1, %s228_s1, %s229_s8  }
 0x17f   :  { %224 = dma.done.wait [#allocation4], 256  }
 0x180   :  { %225 = vsyncadd [#allocation4], 4294967040 }
 0x181   :  { %117 = vsyncpa [#allocation3], 1 }
 0x182   :  { %118 = vsyncpa [#allocation6], 1 }
 0x183   :  { %119 = vsyncpa [#allocation4], 1 }

</bundles_post_ra>
